<compile_context>
chip_gen: v7x
topology: tpu7x:2x2x1
jax: 0.10.0
libtpu: 0.0.40
codegen_flags: <defaults>
</compile_context>

<pallas_src>
import math
from functools import partial

import jax
import jax.numpy as jnp
from jax.experimental import pallas as pl
from jax.experimental.pallas import tpu as pltpu


def _layernorm(x, gamma, beta, eps=1e-5):
    mu = jnp.mean(x, axis=-1, keepdims=True)
    xc = x - mu
    var = jnp.mean(xc * xc, axis=-1, keepdims=True)   # biased var, like nn.LayerNorm
    return xc * jax.lax.rsqrt(var + eps) * gamma + beta


def _gelu(x):
    # TODO(synk): PyTorch nn.GELU() default is the exact erf-based GELU; the tanh
    # approximation is used since lax.erf is not guaranteed to lower in Mosaic.
    return jax.nn.gelu(x, approximate=True)


def _dot_nt(a, b):
    """a (m, k) @ b(n, k)^T -> (m, n), f32 accumulation, no explicit transpose."""
    return jax.lax.dot_general(a, b, (((1,), (1,)), ((), ())),
                               preferred_element_type=jnp.float32)


def vit_encoder_kernel(n_heads, mlp_chunk,
                       x_ref, g1_ref, b1_ref,
                       wqkv_ref, bqkv_ref, wo_ref, bo_ref,
                       g2_ref, b2_ref,
                       w1_ref, bm1_ref, w2_ref, bm2_ref,
                       out_ref):
    x = x_ref[0].astype(jnp.float32)                  # (S, D) for this batch element
    S, D = x.shape
    hd = D // n_heads
    scale = 1.0 / math.sqrt(hd)

    # ---- norm1 + fused QKV projection (bf16 in, f32 acc) -------------------
    ln1 = _layernorm(x, g1_ref[...], b1_ref[...])
    qkv = jnp.dot(ln1.astype(jnp.bfloat16), wqkv_ref[...],
                  preferred_element_type=jnp.float32) + bqkv_ref[...]
    # Fold the 1/sqrt(hd) scale into q once (cheaper than scaling each SxS score).
    qb = (qkv[:, 0:D] * scale).astype(jnp.bfloat16)
    kb = qkv[:, D:2 * D].astype(jnp.bfloat16)
    vb = qkv[:, 2 * D:3 * D].astype(jnp.bfloat16)

    # ---- per-head attention; single fused output projection ----------------
    # TODO(synk): for many heads at real ViT dims, pre-splitting q/k/v into an
    # (H, S, hd) scratch (one relayout) would avoid repeated lane slicing.
    ctx_heads = []
    for h in range(n_heads):                          # static unroll over heads
        sl = slice(h * hd, (h + 1) * hd)
        s = _dot_nt(qb[:, sl], kb[:, sl])             # (S, S) f32 scores
        s = s - jnp.max(s, axis=-1, keepdims=True)    # numerically stable softmax
        e = jnp.exp(s)
        inv = pl.reciprocal(jnp.sum(e, axis=-1, keepdims=True), approx=True)
        p = (e * inv).astype(jnp.bfloat16)
        ctx_heads.append(jnp.dot(p, vb[:, sl], preferred_element_type=jnp.float32))
    ctx = jnp.concatenate(ctx_heads, axis=-1)         # (S, D) = concat of heads
    attn = jnp.dot(ctx.astype(jnp.bfloat16), wo_ref[...],
                   preferred_element_type=jnp.float32) + bo_ref[...]

    x1 = x + attn                                     # first residual

    # ---- norm2 + MLP, chunked over the 4D hidden dim -----------------------
    ln2 = _layernorm(x1, g2_ref[...], b2_ref[...]).astype(jnp.bfloat16)
    H4 = w1_ref.shape[1]
    mlp = jnp.zeros((S, D), jnp.float32)
    for c0 in range(0, H4, mlp_chunk):                # static unroll over chunks
        c1 = min(c0 + mlp_chunk, H4)
        h1 = jnp.dot(ln2, w1_ref[:, c0:c1],
                     preferred_element_type=jnp.float32) + bm1_ref[:, c0:c1]
        h1 = _gelu(h1).astype(jnp.bfloat16)
        mlp = mlp + jnp.dot(h1, w2_ref[c0:c1, :],
                            preferred_element_type=jnp.float32)

    out_ref[0] = (x1 + mlp + bm2_ref[...]).astype(out_ref.dtype)  # second residual


def vit_encoder(x, params, n_heads, mlp_chunk=512):
    B, S, D = x.shape
    H4 = params["w1"].shape[1]
    wdt = jnp.bfloat16

    # Fuse Q|K|V weights/biases; cast all weight matrices to bf16 (f32 accumulate
    # in-kernel).  Biases / LayerNorm params stay f32.
    wqkv = jnp.concatenate([params["wq"], params["wk"], params["wv"]], axis=1).astype(wdt)
    bqkv = jnp.concatenate([params["bq"], params["bk"], params["bv"]], axis=1)
    plist = [
        params["g1"], params["b1"],
        wqkv, bqkv,
        params["wo"].astype(wdt), params["bo"],
        params["g2"], params["b2"],
        params["w1"].astype(wdt), params["bm1"],
        params["w2"].astype(wdt), params["bm2"],
    ]

    def const_spec(p):
        nd = p.ndim
        return pl.BlockSpec(p.shape, lambda b, _nd=nd: (0,) * _nd)

    # TODO(synk): for long sequences (S >> 512) add a sequence-tile grid axis /
    # split attention from the MLP; at ViT sizes the full-sequence block fits VMEM.
    in_specs = [pl.BlockSpec((1, S, D), lambda b: (b, 0, 0))]
    in_specs += [const_spec(p) for p in plist]
    out_spec = pl.BlockSpec((1, S, D), lambda b: (b, 0, 0))

    flops = B * S * D * (24 * D + 4 * S)
    transcendentals = B * (n_heads * S * S + S * H4)
    bytes_accessed = 2 * B * S * D * 4 + sum(int(p.size) * p.dtype.itemsize for p in plist)

    return pl.pallas_call(
        partial(vit_encoder_kernel, n_heads, mlp_chunk),
        out_shape=jax.ShapeDtypeStruct((B, S, D), x.dtype),
        grid_spec=pltpu.PrefetchScalarGridSpec(
            num_scalar_prefetch=0,
            grid=(B,),
            in_specs=in_specs,
            out_specs=out_spec,
        ),
        compiler_params=pltpu.CompilerParams(
            dimension_semantics=("parallel",),
            vmem_limit_bytes=48 * 1024 * 1024,   # above 16/32 MiB defaults, < v7x physical
        ),
        cost_estimate=pl.CostEstimate(flops=flops,
                                      transcendentals=transcendentals,
                                      bytes_accessed=bytes_accessed),
    )(x, *plist)


def init_params(key, d):
    """Deterministic init mirroring nn.Linear / nn.LayerNorm shapes."""
    def linear(k, in_f, out_f):
        k1, k2 = jax.random.split(k)
        bound = 1.0 / math.sqrt(in_f)
        w = jax.random.uniform(k1, (out_f, in_f), jnp.float32, -bound, bound)
        b = jax.random.uniform(k2, (out_f,), jnp.float32, -bound, bound)
        return w.T, b.reshape(1, out_f)               # (in, out), (1, out)

    ks = jax.random.split(key, 6)
    wq, bq = linear(ks[0], d, d)
    wk, bk = linear(ks[1], d, d)
    wv, bv = linear(ks[2], d, d)
    wo, bo = linear(ks[3], d, d)
    w1, bm1 = linear(ks[4], d, 4 * d)
    w2, bm2 = linear(ks[5], 4 * d, d)
    return {
        "g1": jnp.ones((1, d), jnp.float32), "b1": jnp.zeros((1, d), jnp.float32),
        "wq": wq, "bq": bq, "wk": wk, "bk": bk, "wv": wv, "bv": bv,
        "wo": wo, "bo": bo,
        "g2": jnp.ones((1, d), jnp.float32), "b2": jnp.zeros((1, d), jnp.float32),
        "w1": w1, "bm1": bm1, "w2": w2, "bm2": bm2,
    }


def vit_encoder_ref(x, p, n_heads, matmul_dtype=jnp.float32):
    """Pure-JAX reference mirroring the PyTorch forward (same tanh-GELU).

    matmul_dtype=bfloat16 matches the kernel's precision choice (bf16 MXU
    inputs, f32 accumulation) so the comparison isolates kernel bugs from
    intentional low-precision effects.
    """
    B, S, D = x.shape
    hd = D // n_heads

    def dot(a, b):
        return jnp.matmul(a.astype(matmul_dtype), b.astype(matmul_dtype),
                          preferred_element_type=jnp.float32)

    ln1 = _layernorm(x, p["g1"], p["b1"])
    q = dot(ln1, p["wq"]) + p["bq"]
    k = dot(ln1, p["wk"]) + p["bk"]
    v = dot(ln1, p["wv"]) + p["bv"]

    split = lambda t: t.reshape(B, S, n_heads, hd).transpose(0, 2, 1, 3)
    qh, kh, vh = split(q), split(k), split(v)
    s = dot(qh, kh.transpose(0, 1, 3, 2)) / math.sqrt(hd)
    w = jax.nn.softmax(s, axis=-1)
    ctx = dot(w, vh).transpose(0, 2, 1, 3).reshape(B, S, D)
    attn = dot(ctx, p["wo"]) + p["bo"]
    x1 = x + attn

    ln2 = _layernorm(x1, p["g2"], p["b2"])
    h = _gelu(dot(ln2, p["w1"]) + p["bm1"])
    mlp = dot(h, p["w2"]) + p["bm2"]
    return x1 + mlp


if __name__ == "__main__":
    B, S, D, N_HEADS = 2, 8, 32, 2

    key = jax.random.PRNGKey(0)
    kx, kp = jax.random.split(key)
    x = jax.random.normal(kx, (B, S, D), jnp.float32)
    params = init_params(kp, D)

    fn = jax.jit(partial(vit_encoder, n_heads=N_HEADS))
    out = jax.block_until_ready(fn(x, params))

    assert out.shape == (B, S, D) and out.dtype == jnp.float32

    # Compare against a reference that uses the same bf16-input / f32-accumulate
    # matmul precision as the kernel (tolerance covers approx-reciprocal softmax).
    ref = vit_encoder_ref(x, params, N_HEADS, matmul_dtype=jnp.bfloat16)
    max_err = float(jnp.max(jnp.abs(out - ref)))
    assert jnp.allclose(out, ref, atol=1e-2, rtol=1e-2), max_err

    print("KERNEL_OK")
</pallas_src>

<mosaic_0001>
module attributes {stable_mosaic.version = 11 : i64} {
  func.func @vit_encoder_kernel(%arg0: i32, %arg1: memref<1x8x32xf32, #tpu.memory_space<vmem>>, %arg2: memref<1x32xf32, #tpu.memory_space<vmem>>, %arg3: memref<1x32xf32, #tpu.memory_space<vmem>>, %arg4: memref<32x96xbf16, #tpu.memory_space<vmem>>, %arg5: memref<1x96xf32, #tpu.memory_space<vmem>>, %arg6: memref<32x32xbf16, #tpu.memory_space<vmem>>, %arg7: memref<1x32xf32, #tpu.memory_space<vmem>>, %arg8: memref<1x32xf32, #tpu.memory_space<vmem>>, %arg9: memref<1x32xf32, #tpu.memory_space<vmem>>, %arg10: memref<32x128xbf16, #tpu.memory_space<vmem>>, %arg11: memref<1x128xf32, #tpu.memory_space<vmem>>, %arg12: memref<128x32xbf16, #tpu.memory_space<vmem>>, %arg13: memref<1x32xf32, #tpu.memory_space<vmem>>, %arg14: memref<1x8x32xf32, #tpu.memory_space<vmem>>) attributes {dimension_semantics = [#tpu.dimension_semantics<parallel>], iteration_bounds = array<i64: 2>, scalar_prefetch = 0 : i64, scratch_operands = 0 : i64, tpu.core_type = #tpu.core_type<tc>, window_params = [{transform_indices = @transform_0, window_bounds = array<i64: 1, 8, 32>}, {pipeline_mode = #tpu.pipeline_mode<synchronous>, transform_indices = @transform_1, window_bounds = array<i64: 1, 32>}, {pipeline_mode = #tpu.pipeline_mode<synchronous>, transform_indices = @transform_2, window_bounds = array<i64: 1, 32>}, {pipeline_mode = #tpu.pipeline_mode<synchronous>, transform_indices = @transform_3, window_bounds = array<i64: 32, 96>}, {pipeline_mode = #tpu.pipeline_mode<synchronous>, transform_indices = @transform_4, window_bounds = array<i64: 1, 96>}, {pipeline_mode = #tpu.pipeline_mode<synchronous>, transform_indices = @transform_5, window_bounds = array<i64: 32, 32>}, {pipeline_mode = #tpu.pipeline_mode<synchronous>, transform_indices = @transform_6, window_bounds = array<i64: 1, 32>}, {pipeline_mode = #tpu.pipeline_mode<synchronous>, transform_indices = @transform_7, window_bounds = array<i64: 1, 32>}, {pipeline_mode = #tpu.pipeline_mode<synchronous>, transform_indices = @transform_8, window_bounds = array<i64: 1, 32>}, {pipeline_mode = #tpu.pipeline_mode<synchronous>, transform_indices = @transform_9, window_bounds = array<i64: 32, 128>}, {pipeline_mode = #tpu.pipeline_mode<synchronous>, transform_indices = @transform_10, window_bounds = array<i64: 1, 128>}, {pipeline_mode = #tpu.pipeline_mode<synchronous>, transform_indices = @transform_11, window_bounds = array<i64: 128, 32>}, {pipeline_mode = #tpu.pipeline_mode<synchronous>, transform_indices = @transform_12, window_bounds = array<i64: 1, 32>}, {transform_indices = @transform_13, window_bounds = array<i64: 1, 8, 32>}]} {
    %c0 = arith.constant 0 : index
    %c0_0 = arith.constant 0 : index
    %c0_1 = arith.constant 0 : index
    %0 = vector.load %arg1[%c0, %c0_0, %c0_1] : memref<1x8x32xf32, #tpu.memory_space<vmem>>, vector<1x8x32xf32>
    %1 = vector.shape_cast %0 : vector<1x8x32xf32> to vector<8x32xf32>
    %c0_2 = arith.constant 0 : index
    %c0_3 = arith.constant 0 : index
    %2 = vector.load %arg2[%c0_2, %c0_3] : memref<1x32xf32, #tpu.memory_space<vmem>>, vector<1x32xf32>
    %c0_4 = arith.constant 0 : index
    %c0_5 = arith.constant 0 : index
    %3 = vector.load %arg3[%c0_4, %c0_5] : memref<1x32xf32, #tpu.memory_space<vmem>>, vector<1x32xf32>
    %cst = arith.constant dense<0.000000e+00> : vector<8xf32>
    %4 = vector.multi_reduction <add>, %1, %cst [1] : vector<8x32xf32> to vector<8xf32>
    %5 = vector.shape_cast %4 : vector<8xf32> to vector<8x1xf32>
    %cst_6 = arith.constant 3.200000e+01 : f32
    %6 = vector.broadcast %cst_6 : f32 to vector<8x1xf32>
    %7 = arith.divf %5, %6 : vector<8x1xf32>
    %8 = vector.broadcast %7 : vector<8x1xf32> to vector<8x32xf32>
    %9 = arith.subf %1, %8 : vector<8x32xf32>
    %10 = arith.mulf %9, %9 : vector<8x32xf32>
    %cst_7 = arith.constant dense<0.000000e+00> : vector<8xf32>
    %11 = vector.multi_reduction <add>, %10, %cst_7 [1] : vector<8x32xf32> to vector<8xf32>
    %12 = vector.shape_cast %11 : vector<8xf32> to vector<8x1xf32>
    %cst_8 = arith.constant 3.200000e+01 : f32
    %13 = vector.broadcast %cst_8 : f32 to vector<8x1xf32>
    %14 = arith.divf %12, %13 : vector<8x1xf32>
    %cst_9 = arith.constant 9.99999974E-6 : f32
    %15 = vector.broadcast %cst_9 : f32 to vector<8x1xf32>
    %16 = arith.addf %14, %15 : vector<8x1xf32>
    %17 = math.rsqrt %16 : vector<8x1xf32>
    %18 = vector.broadcast %17 : vector<8x1xf32> to vector<8x32xf32>
    %19 = arith.mulf %9, %18 : vector<8x32xf32>
    %20 = vector.broadcast %2 : vector<1x32xf32> to vector<8x32xf32>
    %21 = arith.mulf %19, %20 : vector<8x32xf32>
    %22 = vector.broadcast %3 : vector<1x32xf32> to vector<8x32xf32>
    %23 = arith.addf %21, %22 : vector<8x32xf32>
    %24 = arith.truncf %23 : vector<8x32xf32> to vector<8x32xbf16>
    %c0_10 = arith.constant 0 : index
    %c0_11 = arith.constant 0 : index
    %25 = vector.load %arg4[%c0_10, %c0_11] : memref<32x96xbf16, #tpu.memory_space<vmem>>, vector<32x96xbf16>
    %cst_12 = arith.constant dense<0.000000e+00> : vector<8x96xf32>
    %26 = tpu.matmul %24, %25, %cst_12 {dimension_numbers = #tpu.dot_dimension_numbers<[1], [0], [0], [1], [0, 0, 1, 1], [], []>} : vector<8x32xbf16>, vector<32x96xbf16>, vector<8x96xf32> -> vector<8x96xf32>
    %c0_13 = arith.constant 0 : index
    %c0_14 = arith.constant 0 : index
    %27 = vector.load %arg5[%c0_13, %c0_14] : memref<1x96xf32, #tpu.memory_space<vmem>>, vector<1x96xf32>
    %28 = vector.broadcast %27 : vector<1x96xf32> to vector<8x96xf32>
    %29 = arith.addf %26, %28 : vector<8x96xf32>
    %30 = vector.extract_strided_slice %29 {offsets = [0, 0], sizes = [8, 32], strides = [1, 1]} : vector<8x96xf32> to vector<8x32xf32>
    %cst_15 = arith.constant 2.500000e-01 : f32
    %31 = vector.broadcast %cst_15 : f32 to vector<8x32xf32>
    %32 = arith.mulf %30, %31 : vector<8x32xf32>
    %33 = arith.truncf %32 : vector<8x32xf32> to vector<8x32xbf16>
    %34 = vector.extract_strided_slice %29 {offsets = [0, 32], sizes = [8, 32], strides = [1, 1]} : vector<8x96xf32> to vector<8x32xf32>
    %35 = arith.truncf %34 : vector<8x32xf32> to vector<8x32xbf16>
    %36 = vector.extract_strided_slice %29 {offsets = [0, 64], sizes = [8, 32], strides = [1, 1]} : vector<8x96xf32> to vector<8x32xf32>
    %37 = arith.truncf %36 : vector<8x32xf32> to vector<8x32xbf16>
    %38 = vector.extract_strided_slice %33 {offsets = [0, 0], sizes = [8, 16], strides = [1, 1]} : vector<8x32xbf16> to vector<8x16xbf16>
    %39 = vector.extract_strided_slice %35 {offsets = [0, 0], sizes = [8, 16], strides = [1, 1]} : vector<8x32xbf16> to vector<8x16xbf16>
    %cst_16 = arith.constant dense<0.000000e+00> : vector<8x8xf32>
    %40 = tpu.matmul %38, %39, %cst_16 {dimension_numbers = #tpu.dot_dimension_numbers<[1], [1], [0], [0], [0, 0, 1, 0], [], []>} : vector<8x16xbf16>, vector<8x16xbf16>, vector<8x8xf32> -> vector<8x8xf32>
    %cst_17 = arith.constant dense<0xFF800000> : vector<8xf32>
    %41 = vector.multi_reduction <maximumf>, %40, %cst_17 [1] : vector<8x8xf32> to vector<8xf32>
    %42 = vector.shape_cast %41 : vector<8xf32> to vector<8x1xf32>
    %43 = vector.broadcast %42 : vector<8x1xf32> to vector<8x8xf32>
    %44 = arith.subf %40, %43 : vector<8x8xf32>
    %45 = math.exp %44 : vector<8x8xf32>
    %cst_18 = arith.constant dense<0.000000e+00> : vector<8xf32>
    %46 = vector.multi_reduction <add>, %45, %cst_18 [1] : vector<8x8xf32> to vector<8xf32>
    %47 = vector.shape_cast %46 : vector<8xf32> to vector<8x1xf32>
    %48 = tpu.reciprocal %47 {approx = true} : vector<8x1xf32> -> vector<8x1xf32>
    %49 = vector.broadcast %48 : vector<8x1xf32> to vector<8x8xf32>
    %50 = arith.mulf %45, %49 : vector<8x8xf32>
    %51 = arith.truncf %50 : vector<8x8xf32> to vector<8x8xbf16>
    %52 = vector.extract_strided_slice %37 {offsets = [0, 0], sizes = [8, 16], strides = [1, 1]} : vector<8x32xbf16> to vector<8x16xbf16>
    %cst_19 = arith.constant dense<0.000000e+00> : vector<8x16xf32>
    %53 = tpu.matmul %51, %52, %cst_19 {dimension_numbers = #tpu.dot_dimension_numbers<[1], [0], [0], [1], [0, 0, 1, 1], [], []>} : vector<8x8xbf16>, vector<8x16xbf16>, vector<8x16xf32> -> vector<8x16xf32>
    %54 = vector.extract_strided_slice %33 {offsets = [0, 16], sizes = [8, 16], strides = [1, 1]} : vector<8x32xbf16> to vector<8x16xbf16>
    %55 = vector.extract_strided_slice %35 {offsets = [0, 16], sizes = [8, 16], strides = [1, 1]} : vector<8x32xbf16> to vector<8x16xbf16>
    %cst_20 = arith.constant dense<0.000000e+00> : vector<8x8xf32>
    %56 = tpu.matmul %54, %55, %cst_20 {dimension_numbers = #tpu.dot_dimension_numbers<[1], [1], [0], [0], [0, 0, 1, 0], [], []>} : vector<8x16xbf16>, vector<8x16xbf16>, vector<8x8xf32> -> vector<8x8xf32>
    %cst_21 = arith.constant dense<0xFF800000> : vector<8xf32>
    %57 = vector.multi_reduction <maximumf>, %56, %cst_21 [1] : vector<8x8xf32> to vector<8xf32>
    %58 = vector.shape_cast %57 : vector<8xf32> to vector<8x1xf32>
    %59 = vector.broadcast %58 : vector<8x1xf32> to vector<8x8xf32>
    %60 = arith.subf %56, %59 : vector<8x8xf32>
    %61 = math.exp %60 : vector<8x8xf32>
    %cst_22 = arith.constant dense<0.000000e+00> : vector<8xf32>
    %62 = vector.multi_reduction <add>, %61, %cst_22 [1] : vector<8x8xf32> to vector<8xf32>
    %63 = vector.shape_cast %62 : vector<8xf32> to vector<8x1xf32>
    %64 = tpu.reciprocal %63 {approx = true} : vector<8x1xf32> -> vector<8x1xf32>
    %65 = vector.broadcast %64 : vector<8x1xf32> to vector<8x8xf32>
    %66 = arith.mulf %61, %65 : vector<8x8xf32>
    %67 = arith.truncf %66 : vector<8x8xf32> to vector<8x8xbf16>
    %68 = vector.extract_strided_slice %37 {offsets = [0, 16], sizes = [8, 16], strides = [1, 1]} : vector<8x32xbf16> to vector<8x16xbf16>
    %cst_23 = arith.constant dense<0.000000e+00> : vector<8x16xf32>
    %69 = tpu.matmul %67, %68, %cst_23 {dimension_numbers = #tpu.dot_dimension_numbers<[1], [0], [0], [1], [0, 0, 1, 1], [], []>} : vector<8x8xbf16>, vector<8x16xbf16>, vector<8x16xf32> -> vector<8x16xf32>
    %70 = tpu.concatenate %53, %69 in 1 : vector<8x16xf32>, vector<8x16xf32> -> vector<8x32xf32>
    %71 = arith.truncf %70 : vector<8x32xf32> to vector<8x32xbf16>
    %c0_24 = arith.constant 0 : index
    %c0_25 = arith.constant 0 : index
    %72 = vector.load %arg6[%c0_24, %c0_25] : memref<32x32xbf16, #tpu.memory_space<vmem>>, vector<32x32xbf16>
    %cst_26 = arith.constant dense<0.000000e+00> : vector<8x32xf32>
    %73 = tpu.matmul %71, %72, %cst_26 {dimension_numbers = #tpu.dot_dimension_numbers<[1], [0], [0], [1], [0, 0, 1, 1], [], []>} : vector<8x32xbf16>, vector<32x32xbf16>, vector<8x32xf32> -> vector<8x32xf32>
    %c0_27 = arith.constant 0 : index
    %c0_28 = arith.constant 0 : index
    %74 = vector.load %arg7[%c0_27, %c0_28] : memref<1x32xf32, #tpu.memory_space<vmem>>, vector<1x32xf32>
    %75 = vector.broadcast %74 : vector<1x32xf32> to vector<8x32xf32>
    %76 = arith.addf %73, %75 : vector<8x32xf32>
    %77 = arith.addf %1, %76 : vector<8x32xf32>
    %c0_29 = arith.constant 0 : index
    %c0_30 = arith.constant 0 : index
    %78 = vector.load %arg8[%c0_29, %c0_30] : memref<1x32xf32, #tpu.memory_space<vmem>>, vector<1x32xf32>
    %c0_31 = arith.constant 0 : index
    %c0_32 = arith.constant 0 : index
    %79 = vector.load %arg9[%c0_31, %c0_32] : memref<1x32xf32, #tpu.memory_space<vmem>>, vector<1x32xf32>
    %cst_33 = arith.constant dense<0.000000e+00> : vector<8xf32>
    %80 = vector.multi_reduction <add>, %77, %cst_33 [1] : vector<8x32xf32> to vector<8xf32>
    %81 = vector.shape_cast %80 : vector<8xf32> to vector<8x1xf32>
    %cst_34 = arith.constant 3.200000e+01 : f32
    %82 = vector.broadcast %cst_34 : f32 to vector<8x1xf32>
    %83 = arith.divf %81, %82 : vector<8x1xf32>
    %84 = vector.broadcast %83 : vector<8x1xf32> to vector<8x32xf32>
    %85 = arith.subf %77, %84 : vector<8x32xf32>
    %86 = arith.mulf %85, %85 : vector<8x32xf32>
    %cst_35 = arith.constant dense<0.000000e+00> : vector<8xf32>
    %87 = vector.multi_reduction <add>, %86, %cst_35 [1] : vector<8x32xf32> to vector<8xf32>
    %88 = vector.shape_cast %87 : vector<8xf32> to vector<8x1xf32>
    %cst_36 = arith.constant 3.200000e+01 : f32
    %89 = vector.broadcast %cst_36 : f32 to vector<8x1xf32>
    %90 = arith.divf %88, %89 : vector<8x1xf32>
    %cst_37 = arith.constant 9.99999974E-6 : f32
    %91 = vector.broadcast %cst_37 : f32 to vector<8x1xf32>
    %92 = arith.addf %90, %91 : vector<8x1xf32>
    %93 = math.rsqrt %92 : vector<8x1xf32>
    %94 = vector.broadcast %93 : vector<8x1xf32> to vector<8x32xf32>
    %95 = arith.mulf %85, %94 : vector<8x32xf32>
    %96 = vector.broadcast %78 : vector<1x32xf32> to vector<8x32xf32>
    %97 = arith.mulf %95, %96 : vector<8x32xf32>
    %98 = vector.broadcast %79 : vector<1x32xf32> to vector<8x32xf32>
    %99 = arith.addf %97, %98 : vector<8x32xf32>
    %100 = arith.truncf %99 : vector<8x32xf32> to vector<8x32xbf16>
    %cst_38 = arith.constant 0.000000e+00 : f32
    %101 = vector.broadcast %cst_38 : f32 to vector<8x32xf32>
    %c0_39 = arith.constant 0 : index
    %c0_40 = arith.constant 0 : index
    %102 = vector.load %arg10[%c0_39, %c0_40] : memref<32x128xbf16, #tpu.memory_space<vmem>>, vector<32x128xbf16>
    %cst_41 = arith.constant dense<0.000000e+00> : vector<8x128xf32>
    %103 = tpu.matmul %100, %102, %cst_41 {dimension_numbers = #tpu.dot_dimension_numbers<[1], [0], [0], [1], [0, 0, 1, 1], [], []>} : vector<8x32xbf16>, vector<32x128xbf16>, vector<8x128xf32> -> vector<8x128xf32>
    %c0_42 = arith.constant 0 : index
    %c0_43 = arith.constant 0 : index
    %104 = vector.load %arg11[%c0_42, %c0_43] : memref<1x128xf32, #tpu.memory_space<vmem>>, vector<1x128xf32>
    %105 = vector.broadcast %104 : vector<1x128xf32> to vector<8x128xf32>
    %106 = arith.addf %103, %105 : vector<8x128xf32>
    %107 = arith.mulf %106, %106 : vector<8x128xf32>
    %108 = arith.mulf %106, %107 : vector<8x128xf32>
    %cst_44 = arith.constant 4.471500e-02 : f32
    %109 = vector.broadcast %cst_44 : f32 to vector<8x128xf32>
    %110 = arith.mulf %109, %108 : vector<8x128xf32>
    %111 = arith.addf %106, %110 : vector<8x128xf32>
    %cst_45 = arith.constant 0.797884583 : f32
    %112 = vector.broadcast %cst_45 : f32 to vector<8x128xf32>
    %113 = arith.mulf %112, %111 : vector<8x128xf32>
    %114 = math.tanh %113 : vector<8x128xf32>
    %cst_46 = arith.constant 1.000000e+00 : f32
    %115 = vector.broadcast %cst_46 : f32 to vector<8x128xf32>
    %116 = arith.addf %115, %114 : vector<8x128xf32>
    %cst_47 = arith.constant 5.000000e-01 : f32
    %117 = vector.broadcast %cst_47 : f32 to vector<8x128xf32>
    %118 = arith.mulf %117, %116 : vector<8x128xf32>
    %119 = arith.mulf %106, %118 : vector<8x128xf32>
    %120 = arith.truncf %119 : vector<8x128xf32> to vector<8x128xbf16>
    %c0_48 = arith.constant 0 : index
    %c0_49 = arith.constant 0 : index
    %121 = vector.load %arg12[%c0_48, %c0_49] : memref<128x32xbf16, #tpu.memory_space<vmem>>, vector<128x32xbf16>
    %cst_50 = arith.constant dense<0.000000e+00> : vector<8x32xf32>
    %122 = tpu.matmul %120, %121, %cst_50 {dimension_numbers = #tpu.dot_dimension_numbers<[1], [0], [0], [1], [0, 0, 1, 1], [], []>} : vector<8x128xbf16>, vector<128x32xbf16>, vector<8x32xf32> -> vector<8x32xf32>
    %123 = arith.addf %101, %122 : vector<8x32xf32>
    %124 = arith.addf %77, %123 : vector<8x32xf32>
    %c0_51 = arith.constant 0 : index
    %c0_52 = arith.constant 0 : index
    %125 = vector.load %arg13[%c0_51, %c0_52] : memref<1x32xf32, #tpu.memory_space<vmem>>, vector<1x32xf32>
    %126 = vector.broadcast %125 : vector<1x32xf32> to vector<8x32xf32>
    %127 = arith.addf %124, %126 : vector<8x32xf32>
    %c0_53 = arith.constant 0 : index
    %c0_54 = arith.constant 0 : index
    %c0_55 = arith.constant 0 : index
    %128 = vector.load %arg14[%c0_53, %c0_54, %c0_55] : memref<1x8x32xf32, #tpu.memory_space<vmem>>, vector<1x8x32xf32>
    %129 = vector.shape_cast %128 : vector<1x8x32xf32> to vector<8x32xf32>
    %130 = vector.shape_cast %127 : vector<8x32xf32> to vector<1x8x32xf32>
    tpu.vector_store %arg14[%c0_53, %c0_54, %c0_55], %130 {strides = array<i32>} : memref<1x8x32xf32, #tpu.memory_space<vmem>>, vector<1x8x32xf32>,
    return
  }
  func.func @transform_0(%arg0: i32) -> (i32, i32, i32) {
    %c0_i32 = arith.constant 0 : i32
    %c0_i32_0 = arith.constant 0 : i32
    %c0_i32_1 = arith.constant 0 : i32
    return %arg0, %c0_i32, %c0_i32_0 : i32, i32, i32
  }
  func.func @transform_1(%arg0: i32) -> (i32, i32) {
    %c0_i32 = arith.constant 0 : i32
    %c0_i32_0 = arith.constant 0 : i32
    %c0_i32_1 = arith.constant 0 : i32
    return %c0_i32, %c0_i32_0 : i32, i32
  }
  func.func @transform_2(%arg0: i32) -> (i32, i32) {
    %c0_i32 = arith.constant 0 : i32
    %c0_i32_0 = arith.constant 0 : i32
    %c0_i32_1 = arith.constant 0 : i32
    return %c0_i32, %c0_i32_0 : i32, i32
  }
  func.func @transform_3(%arg0: i32) -> (i32, i32) {
    %c0_i32 = arith.constant 0 : i32
    %c0_i32_0 = arith.constant 0 : i32
    %c0_i32_1 = arith.constant 0 : i32
    return %c0_i32, %c0_i32_0 : i32, i32
  }
  func.func @transform_4(%arg0: i32) -> (i32, i32) {
    %c0_i32 = arith.constant 0 : i32
    %c0_i32_0 = arith.constant 0 : i32
    %c0_i32_1 = arith.constant 0 : i32
    return %c0_i32, %c0_i32_0 : i32, i32
  }
  func.func @transform_5(%arg0: i32) -> (i32, i32) {
    %c0_i32 = arith.constant 0 : i32
    %c0_i32_0 = arith.constant 0 : i32
    %c0_i32_1 = arith.constant 0 : i32
    return %c0_i32, %c0_i32_0 : i32, i32
  }
  func.func @transform_6(%arg0: i32) -> (i32, i32) {
    %c0_i32 = arith.constant 0 : i32
    %c0_i32_0 = arith.constant 0 : i32
    %c0_i32_1 = arith.constant 0 : i32
    return %c0_i32, %c0_i32_0 : i32, i32
  }
  func.func @transform_7(%arg0: i32) -> (i32, i32) {
    %c0_i32 = arith.constant 0 : i32
    %c0_i32_0 = arith.constant 0 : i32
    %c0_i32_1 = arith.constant 0 : i32
    return %c0_i32, %c0_i32_0 : i32, i32
  }
  func.func @transform_8(%arg0: i32) -> (i32, i32) {
    %c0_i32 = arith.constant 0 : i32
    %c0_i32_0 = arith.constant 0 : i32
    %c0_i32_1 = arith.constant 0 : i32
    return %c0_i32, %c0_i32_0 : i32, i32
  }
  func.func @transform_9(%arg0: i32) -> (i32, i32) {
    %c0_i32 = arith.constant 0 : i32
    %c0_i32_0 = arith.constant 0 : i32
    %c0_i32_1 = arith.constant 0 : i32
    return %c0_i32, %c0_i32_0 : i32, i32
  }
  func.func @transform_10(%arg0: i32) -> (i32, i32) {
    %c0_i32 = arith.constant 0 : i32
    %c0_i32_0 = arith.constant 0 : i32
    %c0_i32_1 = arith.constant 0 : i32
    return %c0_i32, %c0_i32_0 : i32, i32
  }
  func.func @transform_11(%arg0: i32) -> (i32, i32) {
    %c0_i32 = arith.constant 0 : i32
    %c0_i32_0 = arith.constant 0 : i32
    %c0_i32_1 = arith.constant 0 : i32
    return %c0_i32, %c0_i32_0 : i32, i32
  }
  func.func @transform_12(%arg0: i32) -> (i32, i32) {
    %c0_i32 = arith.constant 0 : i32
    %c0_i32_0 = arith.constant 0 : i32
    %c0_i32_1 = arith.constant 0 : i32
    return %c0_i32, %c0_i32_0 : i32, i32
  }
  func.func @transform_13(%arg0: i32) -> (i32, i32, i32) {
    %c0_i32 = arith.constant 0 : i32
    %c0_i32_0 = arith.constant 0 : i32
    %c0_i32_1 = arith.constant 0 : i32
    return %arg0, %c0_i32, %c0_i32_0 : i32, i32, i32
  }
}

</mosaic_0001>

<bundles_post_ra>
// kernel: vit_encoder.1
= control target key start
LH: loop header
LB: loop body
LE: loop exit
PB: predicated region body
PF: predicated region fallthrough
CT: control target
= control target key end

     0   :  { %s1708_s0 = inlined_call_operand.vmem [shape: f32[2,8,32], index: 0, kind: input, shape index: {}]   ;;  %s1709_s1 = inlined_call_operand.vmem [shape: f32[1,32], index: 1, kind: input, shape index: {}]   ;;  %s1710_s2 = inlined_call_operand.vmem [shape: f32[1,32], index: 2, kind: input, shape index: {}]   ;;  %s1711_s3 = inlined_call_operand.vmem [shape: bf16[32,96], index: 3, kind: input, shape index: {}]   ;;  %s1712_s4 = inlined_call_operand.vmem [shape: f32[1,96], index: 4, kind: input, shape index: {}]   ;;  %s1713_s5 = inlined_call_operand.vmem [shape: bf16[32,32], index: 5, kind: input, shape index: {}]   ;;  %s1714_s6 = inlined_call_operand.vmem [shape: f32[1,32], index: 6, kind: input, shape index: {}]   ;;  %s1715_s7 = inlined_call_operand.vmem [shape: f32[1,32], index: 7, kind: input, shape index: {}]   ;;  %s1716_s8 = inlined_call_operand.vmem [shape: f32[1,32], index: 8, kind: input, shape index: {}]   ;;  %s1717_s9 = inlined_call_operand.vmem [shape: bf16[32,128], index: 9, kind: input, shape index: {}]   ;;  %s1718_s10 = inlined_call_operand.vmem [shape: f32[1,128], index: 10, kind: input, shape index: {}]   ;;  %s1719_s11 = inlined_call_operand.vmem [shape: bf16[128,32], index: 11, kind: input, shape index: {}]   ;;  %s1720_s12 = inlined_call_operand.vmem [shape: f32[1,32], index: 12, kind: input, shape index: {}]   ;;  %s1721_s13 = inlined_call_operand.hbm [shape: f32[2,8,32], index: 13, kind: output, shape index: {}]  }
   0x1   :  { %1722 = sst [smem:[#allocation5_spill]] %s1708_s0 }
   0x2   :  { %1723 = sst [smem:[#allocation6_spill]] %s1709_s1 }
   0x3   :  { %1724 = sst [smem:[#allocation7_spill]] %s1710_s2 }
   0x4   :  { %18 = vsyncpa [#allocation3], 0 }
   0x5   :  { %20 = vsyncpa [#allocation3 + $0x1], 0  ;;  %s1479_s25 = smov 0   ;;  %s1481_s26 = smov 0  }
   0x6   :  { %s1483_s27 = smov 0   ;;  %s1485_s28 = smov 0  }
   0x7 LB: > { %s1500_s29 = sadd.s32 4294967295, %s1398_s28   ;;  %s1128_s30 = sadd.s32 4294967294, %s1398_s28   ;;  %s1398_s28 = sphi %s1485_s28, %s1733_s28   ;;  %s1394_s27 = sphi %s1483_s27, %s1732_s27   ;;  %s1390_s26 = sphi %s1481_s26, %s1731_s26   ;;  %s1386_s25 = sphi %s1479_s25, %s1730_s25  }
   0x8   : > { %s1504_s14 = sadd.s32 1, %s1398_s28   ;;  %s311_s15 = sadd.s32 1, %s1394_s27 }
   0x9   : > { %s308_s16 = ssub.s32 %s1398_s28, %s1504_s14  ;;  %p321_p0 = scmp.ne.s32.totalorder %s1394_s27, %s1390_s26 }
   0xa   : > { %p309_p1 = scmp.eq.s32.totalorder %s308_s16, 0  ;;  %p322_p2 = scmp.eq.s32.totalorder %s1500_s29, 1 }
   0xb   : > { %p327_p3 = scmp.ne.s32.totalorder %s1390_s26, %s1386_s25  ;;  %p328_p4 = scmp.eq.s32.totalorder %s1128_s30, 1 }
   0xc   : > { %s1515_s17 = scalar_select %p309_p1, %s1394_s27, %s311_s15  }
   0xd   : > { %p1517_p5 = por %p322_p2, %p321_p0  ;;  %p1521_p6 = por %p328_p4, %p327_p3 }
   0xe   : > { %p1131_p7 = scmp.ge.s32.totalorder %s1398_s28, 1  ;;  %p389_p8 = scmp.lt.s32.totalorder %s1398_s28, 3 }
  0x10   : > { %p390_p9 = pnand %p1131_p7, %p389_p8 }
  0x11   : > { %p432_p10 = scmp.lt.s32.totalorder (!%p390_p9), %s1500_s29, 1  ;;  %vm440_vm0 = vcmask (!%p390_p9), 261120   ;;  %s1727_s0 = sld [smem:[#allocation5_spill]] (!%p390_p9)  ;;  %v1308_v7 = vld [vmem:[%s1711_s3] sm:$0xff] (!%p390_p9)   ;;  %v1400_v8 = vmov (!%p390_p9), 0.0   ;;  %vm1401_vm1 = vmmov (!%p390_p9), 0  }
  0x12   : > { %393 = sbr.rel (%p390_p9) target bundleno = 2554 (0x9fa), region = 72  ;;  %1193 = vmatprep.subr.bf16.mxu0 (!%p390_p9), %v1400_v8  ;;  %1197 = vmatprep.mubr.msk.bf16.mxu0 (!%p390_p9), %vm1401_vm1, %v1400_v8  ;;  %v1309_v9 = vld [vmem:[%s1711_s3 + $0x8] sm:$0xff] (!%p390_p9)   ;;  %s1728_s1 = sld [smem:[#allocation6_spill]] (!%p390_p9)  ;;  %v1136_v20 = vld [vmem:[%s1712_s4] ss:$0 sm:$0xff] (!%p390_p9)  ;;  %vm542_vm2 = vcmask (!%p390_p9), 130048  }
  0x13   : > { %1194 = vmatpush3.bf16.msra.mxu0 (!%p390_p9), %v1308_v7  ;;  %1213 = vmatprep.subr.bf16.mxu1 (!%p390_p9), %v1400_v8  ;;  %s1729_s2 = sld [smem:[#allocation7_spill]] (!%p390_p9)  ;;  %s1402_s16 = smov (!%p390_p9), 96   ;;  %vm589_vm3 = vcmask (!%p390_p9), 64512   ;;  %vm607_vm4 = vcmask (!%p390_p9), 1043456  }
  0x14   : > { %1195 = vmatprep.subr.bf16.mxu0 (!%p390_p9), %v1400_v8  ;;  %1215 = vmatprep.mubr.msk.bf16.mxu1 (!%p390_p9), %vm1401_vm1, %v1400_v8  ;;  %s1405_s22 = smov (!%p390_p9), 48   ;;  %s1406_s23 = smov (!%p390_p9), 64  }
  0x15   : > { %s429_s30 = sand.u32 (!%p390_p9), 1, %s1390_s26  }
  0x16   : > { %s1132_s15 = sshll.u32 (!%p390_p9), %s429_s30, 3 }
  0x17   : > { %1196 = vmatpush3.bf16.msra.mxu0 (!%p390_p9), %v1309_v9 }
  0x18   : > { %1201 = vmatprep.subr.bf16.mxu0 (!%p390_p9), %v1400_v8  ;;  %v1134_v14 = vld [vmem:[%s1728_s1] ss:$0 sm:$0xff] (!%p390_p9) }
  0x19   : > { %s433_s20 = scalar_select %p432_p10, %s1500_s29, 1  ;;  %v1135_v16 = vld [vmem:[%s1729_s2] ss:$0 sm:$0xff] }
  0x1b   : > { %s1133_s21 = sshll.u32 %s433_s20, 3  ;;  %s1403_s20 = smov 112  }
  0x1c   : > { %s435_s24 = scalar_lea.vmem %s1727_s0, %s1133_s21  ;;  %s1404_s21 = smov 80  }
  0x1d   : > { %v1532_v0 = vld [vmem:[%s435_s24] sm:$0xff] }
  0x1e   : > { %v441_v1 = vsel %vm440_vm0, %v1532_v0, 0.0 }
  0x1f   : > { %442 = vadd.xlane.f32.xlu0 %v441_v1 }
  0xac   : > { %v443_v2 = vpop.xlane.xlu0 %442 }
  0xad   : > { %v445_v3 = vmul.f32 0.03125, %v443_v2 }
  0xaf   : > { %v446_v4 = vsub.f32 %v1532_v0, %v445_v3  ;;  %v1310_v3 = vld [vmem:[%s1713_s5] sm:$0xff]  }
  0xb1   : > { %v447_v5 = vmul.f32 %v446_v4, %v446_v4 }
  0xb3   : > { %v448_v6 = vsel %vm440_vm0, %v447_v5, 0.0 }
  0xb4   : > { %449 = vadd.xlane.f32.xlu0 %v448_v6 }
 0x141   : > { %v450_v10 = vpop.xlane.xlu0 %449 }
 0x142   : > { %v451_v11 = vmul.f32 0.03125, %v450_v10 }
 0x144   : > { %v452_v12 = vadd.f32 1e-05, %v451_v11 }
 0x146   : > { %1322 = vrsqrt.f32 %v452_v12 }
 0x150   : > { %v1323_v13 = vpop.eup %1322 }
 0x151   : > { %v454_v15 = vmul.f32 %v1323_v13, %v446_v4  ;;  %v1311_v4 = vld [vmem:[%s1713_s5 + $0x8] sm:$0xff]  }
 0x153   : > { %v461_v17 = vmul.f32 %v1134_v14, %v454_v15 }
 0x155   : > { %v468_v18 = vadd.f32 %v1135_v16, %v461_v17  ;;  %v1144_v17 = vld [vmem:[%s1714_s6] ss:$0 sm:$0xff] }
 0x157   : > { %v469_v19 = vpack.c.bf16 %v468_v18, %v468_v18 }
 0x159   : > { %1198 = vmatmul.mubr.msk.bf16.vlgmr.msra.gmra.mrb[0].mxu0 %vm440_vm0, %v469_v19 }
 0x15a   : > { %1203 = vmatprep.mubr.msk.bf16.mxu0 %vm1401_vm1, %v1400_v8 }
 0x22c   : > { %v530_v21 = vpop.f32.mrb[0].mxu0 }
 0x22d   : > { %v531_v22 = vadd.f32 %v1136_v20, %v530_v21  ;;  %v1199_v23 = vpop.f32.mrb[1].mxu0 }
 0x22e   : > { %v533_v24 = vpop.f32.mrb[2].mxu0 }
 0x22f   : > { %v536_v25 = vmul.f32 0.25, %v531_v22  ;;  %v538_v26 = vpack.c.bf16 %v531_v22, %v531_v22  ;;  %v1200_v27 = vpop.f32.mrb[3].mxu0 }
 0x231   : > { %v537_v28 = vpack.c.bf16 %v536_v25, %v536_v25  ;;  %540 = vrot.lane.b32.xlu1 %v538_v26, %s1402_s16  ;;  %s1408_s16 = smov [#allocation2]  }
 0x233   : > { %652 = vrot.lane.b32.xlu0 %v537_v28, %s1403_s20  ;;  %s1407_s20 = smov 16  }
 0x235   : > { %654 = vrot.lane.b32.xlu1 %v538_v26, %s1404_s21  ;;  %s1164_s21 = sshll.u32 %s1500_s29, 7  ;;  %s1056_s29 = scalar_lea.sflag [#allocation3], %s429_s30 }
 0x236   : > { %s1665_s1 = scalar_lea.hbm %s1721_s13, %s1164_s21 }
 0x2a3   : > { %v541_v29 = vpop.permute.xlu1 %540 }
 0x2a4   : > { %v547_v30 = vsel %vm542_vm2, %v541_v29, 0 }
 0x2a5   : > { %1202 = vmatpush3.bf16.xpose.msra.mxu0 %v547_v30  ;;  %v653_v33 = vpop.permute.xlu0 %652  ;;  %v1312_v30 = vld [vmem:[%s1717_s9] sm:$0xff]  }
 0x2a6   : > { %1207 = vmatprep.subr.bf16.mxu0 %v1400_v8 }
 0x2a7   : > { %v655_v31 = vpop.permute.xlu1 %654 }
 0x2a8   : > { %v660_v32 = vsel %vm542_vm2, %v655_v31, 0 }
 0x2a9   : > { %1214 = vmatpush3.bf16.xpose.msra.mxu1 %v660_v32 }
 0x2aa   : > { %1225 = vmatprep.subr.bf16.mxu1 %v1400_v8 }
 0x2ac   : > { %1204 = vmatmul.mubr.msk.bf16.vlgmr.msra.gmra.mrb[4].mxu0 %vm542_vm2, %v537_v28 }
 0x2ad   : > { %1209 = vmatprep.mubr.msk.bf16.mxu0 %vm1401_vm1, %v1400_v8 }
 0x2b0   : > { %1216 = vmatmul.mubr.msk.bf16.vlgmr.msra.gmra.mrb[0].mxu1 %vm542_vm2, %v653_v33 }
 0x2b1   : > { %1229 = vmatprep.mubr.msk.bf16.mxu1 %vm1401_vm1, %v1400_v8  ;;  %1226 = vmatpush3.bf16.msra.mxu1 %v1310_v3 }
 0x2b2   : > { %1227 = vmatprep.subr.bf16.mxu1 %v1400_v8 }
 0x2b5   : > { %1228 = vmatpush3.bf16.msra.mxu1 %v1311_v4 }
 0x2b6   : > { %1241 = vmatprep.subr.bf16.mxu1 %v1400_v8 }
 0x37f   : > { %v583_v34 = vpop.f32.mrb[4].mxu0 }
 0x380   : > { %v1205_v35 = vpop.f32.mrb[5].mxu0  ;;  %v590_v36 = vsel %vm589_vm3, %v583_v34, -inf }
 0x381   : > { %591 = vmax.xlane.f32.xlu1 %v590_v36  ;;  %v586_v37 = vpop.f32.mrb[6].mxu0  ;;  %v1148_v35 = vld [vmem:[%s1715_s7] ss:$0 sm:$0xff] }
 0x382   : > { %v1206_v38 = vpop.f32.mrb[7].mxu0  ;;  %v1149_v37 = vld [vmem:[%s1716_s8] ss:$0 sm:$0xff] }
 0x383   : > { %v696_v39 = vpop.f32.mrb[0].mxu1 }
 0x384   : > { %v1217_v40 = vpop.f32.mrb[1].mxu1  ;;  %v702_v41 = vsel %vm589_vm3, %v696_v39, -inf }
 0x385   : > { %703 = vmax.xlane.f32.xlu0 %v702_v41  ;;  %v699_v42 = vpop.f32.mrb[2].mxu1  ;;  %v1314_v41 = vld [vmem:[%s1719_s11] sm:$0xff]  }
 0x386   : > { %v1218_v43 = vpop.f32.mrb[3].mxu1  ;;  %v1315_v42 = vld [vmem:[%s1719_s11 + $0x8] sm:$0xff]  }
 0x387   : > { %v1316_v43 = vld [vmem:[%s1719_s11 + $0x10] sm:$0xff]  }
 0x39b   : > { %714 = vrot.lane.b32.xlu0 %v538_v26, %s1405_s22  ;;  %s431_s22 = scalar_lea.vmem [#allocation2], %s1132_s15 }
 0x40e   : > { %v592_v44 = vpop.xlane.xlu1 %591 }
 0x40f   : > { %v593_v45 = vsub.f32 %v583_v34, %v592_v44  ;;  %v1317_v44 = vld [vmem:[%s1719_s11 + $0x18] sm:$0xff]  }
 0x411   : > { %v594_v46 = vmul.f32 1.442695, %v593_v45  ;;  %v1318_v45 = vld [vmem:[%s1719_s11 + $0x20] sm:$0xff]  }
 0x412   : > { %v704_v47 = vpop.xlane.xlu0 %703 }
 0x413   : > { %1324 = vpow2.f32 %v594_v46  ;;  %v705_v48 = vsub.f32 %v696_v39, %v704_v47  ;;  %v1319_v46 = vld [vmem:[%s1719_s11 + $0x28] sm:$0xff]   ;;  %v1320_v47 = vld [vmem:[%s1719_s11 + $0x30] sm:$0xff]  }
 0x415   : > { %v706_v49 = vmul.f32 1.442695, %v705_v48  ;;  %v1321_v48 = vld [vmem:[%s1719_s11 + $0x38] sm:$0xff]  }
 0x416   : > { %v715_v60 = vpop.permute.xlu0 %714 }
 0x417   : > { %1326 = vpow2.f32 %v706_v49  ;;  %v720_v63 = vsel %vm607_vm4, %v715_v60, 0  ;;  %v1150_v49 = vld [vmem:[%s1718_s10] ss:$0 sm:$0xff] }
 0x41d   : > { %v1325_v50 = vpop.eup %1324 }
 0x41e   : > { %v596_v51 = vsel %vm589_vm3, %v1325_v50, 0.0 }
 0x41f   : > { %597 = vadd.xlane.f32.xlu1 %v596_v51 }
 0x421   : > { %v1327_v52 = vpop.eup %1326 }
 0x422   : > { %v708_v53 = vsel %vm589_vm3, %v1327_v52, 0.0 }
 0x423   : > { %709 = vadd.xlane.f32.xlu1 %v708_v53 }
 0x434   : > { %602 = vrot.lane.b32.xlu1 %v538_v26, %s1406_s23  ;;  %s1069_s23 = sshll.u32 %s431_s22, 4  ;;  %s1667_s23 = int_to_ptr.vmem [resolvable:$true] %s1069_s23 }
 0x435   : > { %s1336_s15 = scalar_lea.vmem %s1667_s23, 128 }
 0x436   : > { %p1337_p11 = scmp.ne.s32.totalorder %s1667_s23, %s1336_s15 }
 0x438   : > { %p1338_p12 = pnand %p1337_p11, %p1517_p5 }
 0x43a   : > { %p1339_p13 = pneg %p1338_p12 }
 0x4ac   : > { %v598_v54 = vpop.xlane.xlu1 %597 }
 0x4ad   : > { %1328 = vrcp.f32 %v598_v54 }
 0x4b0   : > { %v710_v55 = vpop.xlane.xlu1 %709 }
 0x4b1   : > { %1330 = vrcp.f32 %v710_v55 }
 0x4b4   : > { %v603_v56 = vpop.permute.xlu1 %602 }
 0x4b5   : > { %v609_v57 = vsel %vm607_vm4, %v603_v56, 0 }
 0x4b6   : > { %1208 = vmatpush3.bf16.msra.mxu0 %v609_v57 }
 0x4b7   : > { %v1329_v58 = vpop.eup %1328  ;;  %1219 = vmatprep.subr.bf16.mxu0 %v1400_v8 }
 0x4b8   : > { %v600_v59 = vmul.f32 %v1329_v58, %v1325_v50 }
 0x4ba   : > { %v601_v61 = vpack.c.bf16 %v600_v59, %v600_v59 }
 0x4bb   : > { %v1331_v62 = vpop.eup %1330 }
 0x4bc   : > { %1210 = vmatmul.mubr.msk.bf16.vlgmr.msra.gmra.mrb[8].mxu0 %vm589_vm3, %v601_v61  ;;  %v712_v1 = vmul.f32 %v1331_v62, %v1327_v52 }
 0x4bd   : > { %1220 = vmatpush3.bf16.msra.mxu0 %v720_v63  ;;  %1221 = vmatprep.mubr.msk.bf16.mxu0 %vm1401_vm1, %v1400_v8 }
 0x4be   : > { %1233 = vmatprep.subr.bf16.mxu0 %v1400_v8  ;;  %v713_v2 = vpack.c.bf16 %v712_v1, %v712_v1 }
 0x4c4   : > { %1222 = vmatmul.mubr.msk.bf16.vlgmr.msra.gmra.mrb[12].mxu0 %vm589_vm3, %v713_v2  ;;  %v1162_v2 = vld [vmem:[%s1720_s12] ss:$0 sm:$0xff] }
 0x4c5   : > { %1237 = vmatprep.mubr.msk.bf16.mxu0 %vm1401_vm1, %v1400_v8  ;;  %1234 = vmatpush3.bf16.msra.mxu0 %v1312_v30 }
 0x4c6   : > { %1235 = vmatprep.subr.bf16.mxu0 %v1400_v8 }
 0x58f   : > { %v645_v5 = vpop.f32.mrb[8].mxu0 }
 0x590   : > { %v1211_v6 = vpop.f32.mrb[9].mxu0 }
 0x591   : > { %v648_v7 = vpop.f32.mrb[10].mxu0 }
 0x592   : > { %v1212_v9 = vpop.f32.mrb[11].mxu0 }
 0x597   : > { %v756_v10 = vpop.f32.mrb[12].mxu0 }
 0x598   : > { %763 = vrot.lane.b32.xlu1 %v756_v10, %s1407_s20  ;;  %v1223_v11 = vpop.f32.mrb[13].mxu0  ;;  %s1340_s20 = sshll.u32 %s1408_s16, 4  ;;  %s1341_s20 = int_to_ptr.vmem [resolvable:$false] %s1340_s20 }
 0x599   : > { %v759_v12 = vpop.f32.mrb[14].mxu0  ;;  %s1342_s2 = scalar_lea.vmem %s1341_s20, 256  ;;  %p1343_p0 = scmp.lt.s32.totalorder %s1667_s23, %s1341_s20 }
 0x59a   : > { %v1224_v13 = vpop.f32.mrb[15].mxu0  ;;  %p1344_p1 = scmp.lt.s32.totalorder %s1342_s2, %s1336_s15 }
 0x59c   : > { %p1345_p2 = por %p1344_p1, %p1343_p0 }
 0x59e   : > { %p1346_p3 = pnand %p1345_p2, %p1339_p13 }
 0x60a   : > { %v764_v14 = vpop.permute.xlu1 %763 }
 0x60b   : > { %v766_v15 = vsel %vm542_vm2, %v645_v5, %v764_v14 }
 0x60c   : > { %v767_v16 = vpack.c.bf16 %v766_v15, %v766_v15 }
 0x60e   : > { %1230 = vmatmul.mubr.msk.bf16.vlgmr.msra.gmra.mrb[4].mxu1 %vm440_vm0, %v767_v16 }
 0x60f   : > { %1257 = vmatprep.mubr.msk.bf16.mxu1 %vm1401_vm1, %v1400_v8  ;;  %1242 = vmatpush3.bf16.msra.mxu1 %v1314_v41 }
 0x610   : > { %1243 = vmatprep.subr.bf16.mxu1 %v1400_v8 }
 0x613   : > { %1244 = vmatpush3.bf16.msra.mxu1 %v1315_v42 }
 0x614   : > { %1245 = vmatprep.subr.bf16.mxu1 %v1400_v8 }
 0x617   : > { %1246 = vmatpush3.bf16.msra.mxu1 %v1316_v43 }
 0x618   : > { %1247 = vmatprep.subr.bf16.mxu1 %v1400_v8 }
 0x61b   : > { %1248 = vmatpush3.bf16.msra.mxu1 %v1317_v44 }
 0x61c   : > { %1249 = vmatprep.subr.bf16.mxu1 %v1400_v8 }
 0x61f   : > { %1250 = vmatpush3.bf16.msra.mxu1 %v1318_v45 }
 0x620   : > { %1251 = vmatprep.subr.bf16.mxu1 %v1400_v8 }
 0x623   : > { %1252 = vmatpush3.bf16.msra.mxu1 %v1319_v46 }
 0x624   : > { %1253 = vmatprep.subr.bf16.mxu1 %v1400_v8 }
 0x627   : > { %1254 = vmatpush3.bf16.msra.mxu1 %v1320_v47 }
 0x628   : > { %1255 = vmatprep.subr.bf16.mxu1 %v1400_v8 }
 0x62b   : > { %1256 = vmatpush3.bf16.msra.mxu1 %v1321_v48 }
 0x6e1   : > { %v828_v18 = vpop.f32.mrb[4].mxu1 }
 0x6e2   : > { %v829_v19 = vadd.f32 %v1144_v17, %v828_v18  ;;  %v1231_v20 = vpop.f32.mrb[5].mxu1 }
 0x6e3   : > { %v831_v21 = vpop.f32.mrb[6].mxu1 }
 0x6e4   : > { %v1602_v22 = vadd.f32 %v829_v19, %v1532_v0  ;;  %v1232_v23 = vpop.f32.mrb[7].mxu1  ;;  %v1313_v0 = vld [vmem:[%s1717_s9 + $0x8] sm:$0xff]  }
 0x6e5   : > { %1236 = vmatpush3.bf16.msra.mxu0 %v1313_v0 }
 0x6e6   : > { %v837_v24 = vsel %vm440_vm0, %v1602_v22, 0.0 }
 0x6e7   : > { %838 = vadd.xlane.f32.xlu1 %v837_v24 }
 0x774   : > { %v839_v25 = vpop.xlane.xlu1 %838 }
 0x775   : > { %v840_v26 = vmul.f32 0.03125, %v839_v25 }
 0x777   : > { %v841_v27 = vsub.f32 %v1602_v22, %v840_v26 }
 0x779   : > { %v842_v28 = vmul.f32 %v841_v27, %v841_v27 }
 0x77b   : > { %v843_v29 = vsel %vm440_vm0, %v842_v28, 0.0 }
 0x77c   : > { %844 = vadd.xlane.f32.xlu0 %v843_v29 }
 0x809   : > { %v845_v31 = vpop.xlane.xlu0 %844 }
 0x80a   : > { %v846_v32 = vmul.f32 0.03125, %v845_v31 }
 0x80c   : > { %v847_v33 = vadd.f32 1e-05, %v846_v32 }
 0x80e   : > { %1332 = vrsqrt.f32 %v847_v33 }
 0x818   : > { %v1333_v34 = vpop.eup %1332 }
 0x819   : > { %v849_v36 = vmul.f32 %v1333_v34, %v841_v27 }
 0x81b   : > { %v856_v38 = vmul.f32 %v1148_v35, %v849_v36 }
 0x81d   : > { %v863_v39 = vadd.f32 %v1149_v37, %v856_v38 }
 0x81f   : > { %v864_v40 = vpack.c.bf16 %v863_v39, %v863_v39 }
 0x821   : > { %1238 = vmatmul.mubr.msk.bf16.vlgmr.msra.gmra.mrb[16].mxu0 %vm440_vm0, %v864_v40 }
 0x8f4   : > { %v925_v50 = vpop.f32.mrb[16].mxu0 }
 0x8f5   : > { %v926_v51 = vadd.f32 %v1150_v49, %v925_v50  ;;  %v1239_v52 = vpop.f32.mrb[17].mxu0 }
 0x8f6   : > { %v928_v53 = vpop.f32.mrb[18].mxu0 }
 0x8f7   : > { %v931_v54 = vmul.f32 %v926_v51, %v926_v51  ;;  %v1240_v55 = vpop.f32.mrb[19].mxu0 }
 0x8f9   : > { %v932_v56 = vmul.f32 %v931_v54, %v926_v51 }
 0x8fb   : > { %v933_v57 = vmul.f32 0.044715, %v932_v56 }
 0x8fd   : > { %v934_v58 = vadd.f32 %v933_v57, %v926_v51 }
 0x8ff   : > { %v935_v59 = vmul.f32 0.7978846, %v934_v58 }
 0x901   : > { %1334 = vtanh.f32 %v935_v59 }
 0x90b   : > { %v1335_v60 = vpop.eup %1334 }
 0x90c   : > { %v937_v8 = vadd.f32 1.0, %v1335_v60 }
 0x90e   : > { %v938_v61 = vmul.f32 0.5, %v937_v8 }
 0x910   : > { %v939_v62 = vmul.f32 %v938_v61, %v926_v51 }
 0x912   : > { %v940_v63 = vpack.c.bf16 %v939_v62, %v939_v62 }
 0x914   : > { %1258 = vmatmul.mubr.bf16.vlgmr.msra.gmra.mrb[8].mxu1 %v940_v63 }
 0x9e7   : > { %v1039_v1 = vpop.f32.mrb[8].mxu1 }
 0x9e8   : > { %v1045_v3 = vadd.f32 %v1039_v1, %v1602_v22  ;;  %v1259_v4 = vpop.f32.mrb[9].mxu1 }
 0x9e9   : > { %v1042_v5 = vpop.f32.mrb[10].mxu1 }
 0x9ea   : > { %v1053_v6 = vadd.f32 %v1162_v2, %v1045_v3  ;;  %v1260_v7 = vpop.f32.mrb[11].mxu1 }
 0x9ec   : > { %1054 = vst.msk [vmem:[%s431_s22] sm:$0xff] %vm440_vm0, %v1053_v6 }
 0x9ed   : > { %1349 = shalt.err (!%p1346_p3)
}
 0x9ee   : > { %s1350_s0 = scalar_lea.hbm %s1665_s1, 128  ;;  %s1354_s22 = scalar_lea.hbm %s1721_s13, 256 }
 0x9ef   : > { %p1351_p4 = scmp.ne.s32.totalorder %s1665_s1, %s1350_s0  ;;  %p1355_p9 = scmp.lt.u32.totalorder %s1665_s1, %s1721_s13 }
 0x9f0   : > { %p1356_p10 = scmp.lt.u32.totalorder %s1354_s22, %s1350_s0  ;;  %p1358_p12 = scmp.lt.u32.totalorder %s1350_s0, %s1665_s1 }
 0x9f1   : > { %p1352_p7 = pnand %p1351_p4, %p1517_p5 }
 0x9f2   : > { %p1357_p11 = por %p1356_p10, %p1355_p9 }
 0x9f3   : > { %p1353_p8 = pneg %p1352_p7 }
 0x9f4   : > { %p1359_p13 = por %p1358_p12, %p1357_p11 }
 0x9f6   : > { %p1360_p0 = pnand %p1359_p13, %p1353_p8 }
 0x9f8   : > { %1363 = shalt.err (!%p1360_p0)
}
 0x9f9   : > { %1261 = dma.vmem_to_hbm [thread:$0]  (%p1517_p5), %s1667_s23, 128, %s1665_s1, %s1056_s29  }
 0x9fa PF: > { %p1267_p1 = scmp.ge.s32.totalorder %s1398_s28, 2  ;;  %s1081_s2 = sand.u32 1, %s1386_s25  }
 0x9fb   : > { %s1082_s15 = scalar_lea.sflag [#allocation3], %s1081_s2 }
 0x9fc   : > { %p1264_p2 = pnand %p1267_p1, %p1521_p6 }
 0x9fe   : > { %1381 = dma.done.wait (!%p1264_p2), %s1082_s15, 128  }
 0x9ff   : > { %1383 = vsyncadd (!%p1264_p2), %s1082_s15, 4294967168  ;;  %p23_p3 = scmp.ge.s32.totalorder %s1504_s14, 4   ;;  %s1730_s25 = smov %s1390_s26 }
 0xa00   : > { %s1731_s26 = smov %s1394_s27  ;;  %s1732_s27 = smov %s1515_s17 }
 0xa01   : > { %s1733_s28 = smov %s1504_s14  ;;  %25 = sbr.rel (!%p23_p3) target bundleno = 7 (0x7), region = 107 }
 0xa08   :  { %1087 = vsyncpa [#allocation3], 1 }
 0xa09   :  { %1089 = vsyncpa [#allocation3 + $0x1], 1 }

</bundles_post_ra>
